<compile_context>
chip_gen: v5e
topology: v5e:2x2
jax: 0.10.0
libtpu: 0.0.40
codegen_flags: <defaults>
</compile_context>

<pallas_src>
import jax
import jax.numpy as jnp
from jax.experimental import pallas as pl
from jax.experimental.pallas import tpu as pltpu


def fused_linear_stack_cat_kernel(x_ref, w_ref, b_ref, o_ref):
    # x_ref: (IN, W)  lane-dense: x[b, k] repeated over its OUT lanes
    # w_ref: (IN, W)  lane-dense: weight.T row k tiled B times
    # b_ref: (1, W)   lane-dense: bias tiled B times
    # o_ref: (2, W)   final fused stack+cat output, W = B*OUT
    IN = x_ref.shape[0]

    # VPU contraction unrolled over IN (== 2): two sublane-broadcast FMAs.
    y = b_ref[...]                                   # (1, W)
    for k in range(IN):
        y = y + x_ref[k : k + 1, :] * w_ref[k : k + 1, :]

    # Fused stack((y, y), dim=1) + cat(., dim=1): both rows identical.
    # Single lane-dense full-ref store (no masked partial writes).
    o_ref[...] = jnp.broadcast_to(y, o_ref.shape)


def model_forward(x, weight, bias):
    """Reproduces Model.forward.

    x:      (B, 2)  float32
    weight: (4, 2)  float32  (PyTorch nn.Linear layout: (out_features, in_features))
    bias:   (4,)    float32
    returns (2, 4*B) float32
    """
    B, IN = x.shape
    OUT = weight.shape[0]
    W = B * OUT

    # Wrapper-side lane plumbing (layout only, fused by XLA; if weights are
    # reused across steps, precompute w_lane / b_lane once outside this call).
    x_lane = jnp.repeat(x.T, OUT, axis=1)            # (IN, W): x[b,k] over its OUT lanes
    w_lane = jnp.tile(weight.T, (1, B))              # (IN, W): weight.T tiled B times
    b_lane = jnp.tile(bias, (B,)).reshape(1, W)      # (1, W)

    vmem = pl.BlockSpec(memory_space=pltpu.MemorySpace.VMEM)
    return pl.pallas_call(
        fused_linear_stack_cat_kernel,
        out_shape=jax.ShapeDtypeStruct((2, W), jnp.float32),
        in_specs=[vmem, vmem, vmem],
        out_specs=vmem,
    )(x_lane, w_lane, b_lane)


if __name__ == "__main__":
    key = jax.random.PRNGKey(0)
    kx, kw, kb = jax.random.split(key, 3)

    B, IN, OUT = 2, 2, 4

    # Deterministic parameter init mimicking nn.Linear (uniform +/- 1/sqrt(in_features)).
    bound = 1.0 / jnp.sqrt(jnp.float32(IN))
    weight = jax.random.uniform(kw, (OUT, IN), jnp.float32, -bound, bound)
    bias = jax.random.uniform(kb, (OUT,), jnp.float32, -bound, bound)

    x = jax.random.normal(kx, (B, IN), jnp.float32)

    out = jax.jit(model_forward)(x, weight, bias)
    jax.block_until_ready(out)

    # Reference check in plain JAX.
    y_ref = x @ weight.T + bias                       # (B, OUT)
    ref = jnp.broadcast_to(y_ref.reshape(1, B * OUT), (2, B * OUT))
    assert out.shape == (2, 4 * B), out.shape
    assert jnp.allclose(out, ref, atol=1e-5, rtol=1e-5)

    print("KERNEL_OK")
</pallas_src>

<mosaic_0001>
module attributes {stable_mosaic.version = 11 : i64} {
  func.func @fused_linear_stack_cat_kernel(%arg0: memref<2x8xf32, #tpu.memory_space<vmem>>, %arg1: memref<2x8xf32, #tpu.memory_space<vmem>>, %arg2: memref<1x8xf32, #tpu.memory_space<vmem>>, %arg3: memref<2x8xf32, #tpu.memory_space<vmem>>) attributes {dimension_semantics = [], scalar_prefetch = 0 : i64, scratch_operands = 0 : i64, tpu.core_type = #tpu.core_type<tc>} {
    %c0 = arith.constant 0 : index
    %c0_0 = arith.constant 0 : index
    %0 = vector.load %arg2[%c0, %c0_0] : memref<1x8xf32, #tpu.memory_space<vmem>>, vector<1x8xf32>
    %c0_1 = arith.constant 0 : index
    %c0_2 = arith.constant 0 : index
    %1 = vector.load %arg0[%c0_1, %c0_2] : memref<2x8xf32, #tpu.memory_space<vmem>>, vector<1x8xf32>
    %c0_3 = arith.constant 0 : index
    %c0_4 = arith.constant 0 : index
    %2 = vector.load %arg1[%c0_3, %c0_4] : memref<2x8xf32, #tpu.memory_space<vmem>>, vector<1x8xf32>
    %3 = arith.mulf %1, %2 : vector<1x8xf32>
    %4 = arith.addf %0, %3 : vector<1x8xf32>
    %c1 = arith.constant 1 : index
    %c0_5 = arith.constant 0 : index
    %5 = vector.load %arg0[%c1, %c0_5] : memref<2x8xf32, #tpu.memory_space<vmem>>, vector<1x8xf32>
    %c1_6 = arith.constant 1 : index
    %c0_7 = arith.constant 0 : index
    %6 = vector.load %arg1[%c1_6, %c0_7] : memref<2x8xf32, #tpu.memory_space<vmem>>, vector<1x8xf32>
    %7 = arith.mulf %5, %6 : vector<1x8xf32>
    %8 = arith.addf %4, %7 : vector<1x8xf32>
    %9 = vector.shape_cast %8 : vector<1x8xf32> to vector<1x8xf32>
    %10 = vector.broadcast %9 : vector<1x8xf32> to vector<2x8xf32>
    %c0_8 = arith.constant 0 : index
    %c0_9 = arith.constant 0 : index
    %11 = vector.load %arg3[%c0_8, %c0_9] : memref<2x8xf32, #tpu.memory_space<vmem>>, vector<2x8xf32>
    tpu.vector_store %arg3[%c0_8, %c0_9], %10 {strides = array<i32>} : memref<2x8xf32, #tpu.memory_space<vmem>>, vector<2x8xf32>,
    return
  }
}

</mosaic_0001>

<bundles_post_ra>
// kernel: tile.18
= control target key start
LH: loop header
LB: loop body
LE: loop exit
PB: predicated region body
PF: predicated region fallthrough
CT: control target
= control target key end

     0   :  { %s22_s0 = inlined_call_operand.vmem [shape: f32[4], index: 0, kind: input, shape index: {}]   ;;  %s23_s1 = inlined_call_operand.vmem [shape: f32[2,4], index: 1, kind: output, shape index: {}]  }
   0x1   :  { %v4_v0 = vld [vmem:[%s22_s0] ss:$0 sm:$0xff] }
   0x2   :  { %5 = vst [vmem:[%s23_s1] sm:$0x3] %v4_v0 }

// kernel: tile.19
= control target key start
LH: loop header
LB: loop body
LE: loop exit
PB: predicated region body
PF: predicated region fallthrough
CT: control target
= control target key end

     0   :  { %vm7_vm0 = vcmask 31744   ;;  %vm13_vm1 = vcmask 64544   ;;  %s39_s0 = inlined_call_operand.vmem [shape: f32[2,4], index: 0, kind: input, shape index: {}]   ;;  %s40_s1 = inlined_call_operand.vmem [shape: f32[1,8], index: 1, kind: output, shape index: {}]  }
   0x1   :  { %v4_v0 = vld [vmem:[%s39_s0] sm:$0x3]  ;;  %s22_s0 = smov 4  }
   0x2   :  { %5 = vst [vmem:[#allocation1] sm:$0x3] %v4_v0 }
   0x9   :  { %v10_v1 = vld [vmem:[#allocation1 + $0x1] sm:$0x1]   ;;  %v6_v2 = vld [vmem:[#allocation1] sm:$0x1]  }
   0xa   :  { %11 = vrot.lane.b32.xlu0 %v10_v1, %s22_s0  ;;  %8 = vst.msk [vmem:[#allocation0] sm:$0x1] %vm7_vm0, %v6_v2  }
  0x7c   :  { %v12_v3 = vpop.permute.xlu0 %11  }
  0x7d   :  { %14 = vst.msk [vmem:[#allocation0] sm:$0x1] %vm13_vm1, %v12_v3  }
  0x84   :  { %v17_v4 = vld [vmem:[#allocation0] sm:$0x1] }
  0x85   :  { %20 = vst [vmem:[%s40_s1] sm:$0x1] %v17_v4 }

// kernel: model_forward.1
= control target key start
LH: loop header
LB: loop body
LE: loop exit
PB: predicated region body
PF: predicated region fallthrough
CT: control target
= control target key end

     0   :  { %s111_s0 = inlined_call_operand.vmem [shape: f32[2,8], index: 0, kind: input, shape index: {}]   ;;  %s112_s1 = inlined_call_operand.vmem [shape: f32[2,8], index: 1, kind: input, shape index: {}]   ;;  %s113_s2 = inlined_call_operand.vmem [shape: f32[1,8], index: 2, kind: input, shape index: {}]   ;;  %s114_s3 = inlined_call_operand.hbm [shape: f32[2,8], index: 3, kind: output, shape index: {}]  }
   0x1   :  { %v15_v0 = vld [vmem:[%s113_s2] sm:$0x1]  ;;  %v20_v4 = vld [vmem:[%s111_s0 + $0x1] sm:$0x1] }
   0x2   :  { %v16_v1 = vld [vmem:[%s111_s0] sm:$0x1]  ;;  %v21_v5 = vld [vmem:[%s112_s1 + $0x1] sm:$0x1] }
   0x3   :  { %v17_v2 = vld [vmem:[%s112_s1] sm:$0x1]  ;;  %v22_v6 = vmul.f32 %v21_v5, %v20_v4 }
   0x4   :  { %v18_v3 = vmul.f32 %v17_v2, %v16_v1 }
   0x5   :  { %8 = vsyncpa [#allocation3], 0  ;;  %s72_s2 = smov [#allocation2]   ;;  %s36_s25 = sshll.u32 %s114_s3, 4  ;;  %vm27_vm0 = vcmask 58368   ;;  %s37_s25 = int_to_ptr.hbm [resolvable:$true] %s36_s25 }
   0x6   :  { %v19_v7 = vadd.f32 %v18_v3, %v15_v0  ;;  %s34_s22 = sshll.u32 %s72_s2, 4  ;;  %s35_s22 = int_to_ptr.vmem [resolvable:$true] %s34_s22 }
   0x8   :  { %v23_v8 = vadd.f32 %v22_v6, %v19_v7 }
   0xa   :  { %v25_v9 = vperm.slane %v23_v8, 0 }
   0xc   :  { %28 = vst.msk [vmem:[#allocation2] sm:$0x3] %vm27_vm0, %v25_v9 }
   0xd   :  { %39 = dma.vmem_to_hbm [thread:$0]  %s35_s22, 32, %s37_s25, [#allocation3]  }
   0xe   :  { %70 = dma.done.wait [#allocation3], 32  }
   0xf   :  { %71 = vsyncadd [#allocation3], 4294967264 }
  0x10   :  { %44 = vsyncpa [#allocation3], 1 }

</bundles_post_ra>
